<compile_context>
chip_gen: v5e
topology: v5e:2x2
jax: 0.10.0
libtpu: 0.0.40
codegen_flags: <defaults>
</compile_context>

<pallas_src>
import functools

import jax
import jax.numpy as jnp
from jax.experimental import pallas as pl
from jax.experimental.pallas import tpu as pltpu


def make_divisible(v, divisor=8, min_value=None):
    min_value = min_value or divisor
    new_v = max(min_value, int(v + divisor / 2) // divisor * divisor)
    if new_v < 0.9 * v:
        new_v += divisor
    return new_v


def _se_kernel(x_ref, w1t_ref, b1_ref, w2t_ref, b2_ref, o_ref):
    """One block of Bn batch elements per grid step.

    x_ref  : (Bn, C, HW)  input tile
    w1t_ref: (C, R)       conv_reduce weight, pre-transposed
    b1_ref : (1, R)       conv_reduce bias
    w2t_ref: (R, C)       conv_expand weight, pre-transposed
    b2_ref : (1, C)       conv_expand bias
    o_ref  : (Bn, C, HW)  output tile
    """
    x = x_ref[...]                                      # (Bn, C, HW)
    hw = x.shape[-1]
    xf = x.astype(jnp.float32)

    # AdaptiveAvgPool2d(1): global mean over the flattened spatial (lane) axis,
    # accumulated in f32.
    pooled = jnp.sum(xf, axis=-1) * (1.0 / hw)          # (Bn, C)

    # conv_reduce (1x1 conv == channel matmul, batched over Bn) + bias + ReLU.
    w1t = w1t_ref[...].astype(jnp.float32)
    h = jnp.dot(pooled, w1t, preferred_element_type=jnp.float32)
    h = jnp.maximum(h + b1_ref[...].astype(jnp.float32), 0.0)       # (Bn, R)

    # conv_expand (1x1 conv, batched over Bn) + bias, then sigmoid gate.
    w2t = w2t_ref[...].astype(jnp.float32)
    s = jnp.dot(h, w2t, preferred_element_type=jnp.float32)
    gate = jax.nn.sigmoid(s + b2_ref[...].astype(jnp.float32))      # (Bn, C)

    # Broadcast-multiply the per-(batch, channel) gate over the lane axis.
    o_ref[...] = (xf * gate[:, :, None]).astype(o_ref.dtype)


def _choose_block_batch(N, C, HW, itemsize, vmem_block_budget=8 * 1024 * 1024):
    """Pick how many batch elements each grid step processes.

    Budget covers the in + out tile, each double-buffered by the Pallas
    pipeline (~4 copies of the block), and stays comfortably under the default
    scoped VMEM limit on every generation (v7x: 64 MiB physical / 32 MiB scoped).
    """
    per_batch_bytes = 4 * C * HW * itemsize
    bn = max(1, min(N, vmem_block_budget // max(per_batch_bytes, 1)))
    # Prefer >=2 grid steps so v7x's two TensorCores both get work, but only
    # when the split blocks are still big enough that per-step overhead stays
    # negligible (>= ~1 MiB per block).
    if bn == N and N > 1 and (N // 2) * C * HW * itemsize >= (1 << 20):
        bn = (N + 1) // 2
    # Block batch must divide N for clean tiling.
    while N % bn != 0:
        bn -= 1
    return bn


@functools.partial(jax.jit, static_argnames=())
def squeeze_excite(x, w_reduce, b_reduce, w_expand, b_expand):
    """x: (N, C, H, W).  Weights follow PyTorch Conv2d 1x1 shapes (squeezed):
       w_reduce: (R, C), b_reduce: (R,), w_expand: (C, R), b_expand: (C,).
    """
    N, C, H, W = x.shape
    R = w_reduce.shape[0]
    HW = H * W

    x_flat = x.reshape(N, C, HW)
    w1t = w_reduce.T                     # (C, R)
    w2t = w_expand.T                     # (R, C)
    b1 = b_reduce.reshape(1, R)
    b2 = b_expand.reshape(1, C)

    bn = _choose_block_batch(N, C, HW, x.dtype.itemsize)
    grid = (N // bn,)
    # NOTE: for real SE configs with small/ragged HW (e.g. 7*7=49) and C a
    # multiple of 128, an NHWC-style (HW, C) in-kernel layout would keep the
    # lane axis dense; the test/default configs here have HW a multiple of 128.

    out_flat = pl.pallas_call(
        _se_kernel,
        out_shape=jax.ShapeDtypeStruct((N, C, HW), x.dtype),
        grid_spec=pltpu.PrefetchScalarGridSpec(
            num_scalar_prefetch=0,
            grid=grid,
            in_specs=[
                pl.BlockSpec((bn, C, HW), lambda n: (n, 0, 0)),  # x (Bn per step)
                pl.BlockSpec((C, R), lambda n: (0, 0)),          # w1^T
                pl.BlockSpec((1, R), lambda n: (0, 0)),          # b1
                pl.BlockSpec((R, C), lambda n: (0, 0)),          # w2^T
                pl.BlockSpec((1, C), lambda n: (0, 0)),          # b2
            ],
            out_specs=pl.BlockSpec((bn, C, HW), lambda n: (n, 0, 0)),
        ),
        compiler_params=pltpu.CompilerParams(
            dimension_semantics=("parallel",)),
    )(x_flat, w1t, b1, w2t, b2)

    return out_flat.reshape(N, C, H, W)


def squeeze_excite_ref(x, w_reduce, b_reduce, w_expand, b_expand):
    """Pure-JAX reference matching the PyTorch forward exactly."""
    pooled = jnp.mean(x, axis=(2, 3), keepdims=True)          # (N, C, 1, 1)
    h = jnp.einsum("nchw,rc->nrhw", pooled, w_reduce) + b_reduce[None, :, None, None]
    h = jax.nn.relu(h)
    s = jnp.einsum("nrhw,cr->nchw", h, w_expand) + b_expand[None, :, None, None]
    return x * jax.nn.sigmoid(s)


if __name__ == "__main__":
    # Module config: in_chs=8, se_ratio=0.25, divisor=1 -> reduced_chs=2
    in_chs = 8
    se_ratio = 0.25
    divisor = 1
    reduced_chs = make_divisible(in_chs * se_ratio, divisor)   # = 2

    N, H, W = 2, 16, 16

    key = jax.random.PRNGKey(0)
    kx, k1, k2, k3, k4 = jax.random.split(key, 5)

    x = jax.random.normal(kx, (N, in_chs, H, W), dtype=jnp.float32)
    # Deterministic synthetic parameters (Conv2d 1x1 weight shapes, squeezed).
    w_reduce = jax.random.normal(k1, (reduced_chs, in_chs), dtype=jnp.float32) * 0.2
    b_reduce = jax.random.normal(k2, (reduced_chs,), dtype=jnp.float32) * 0.1
    w_expand = jax.random.normal(k3, (in_chs, reduced_chs), dtype=jnp.float32) * 0.2
    b_expand = jax.random.normal(k4, (in_chs,), dtype=jnp.float32) * 0.1

    out = squeeze_excite(x, w_reduce, b_reduce, w_expand, b_expand)
    out = jax.block_until_ready(out)

    ref = squeeze_excite_ref(x, w_reduce, b_reduce, w_expand, b_expand)
    assert out.shape == x.shape
    assert jnp.allclose(out, ref, atol=1e-5, rtol=1e-5), "mismatch vs reference"

    print("KERNEL_OK")
</pallas_src>

<mosaic_0001>
module attributes {stable_mosaic.version = 11 : i64} {
  func.func @_se_kernel(%arg0: i32, %arg1: memref<2x8x256xf32, #tpu.memory_space<vmem>>, %arg2: memref<8x2xf32, #tpu.memory_space<vmem>>, %arg3: memref<1x2xf32, #tpu.memory_space<vmem>>, %arg4: memref<2x8xf32, #tpu.memory_space<vmem>>, %arg5: memref<1x8xf32, #tpu.memory_space<vmem>>, %arg6: memref<2x8x256xf32, #tpu.memory_space<vmem>>) attributes {dimension_semantics = [#tpu.dimension_semantics<parallel>], iteration_bounds = array<i64: 1>, scalar_prefetch = 0 : i64, scratch_operands = 0 : i64, tpu.core_type = #tpu.core_type<tc>, window_params = [{transform_indices = @transform_0, window_bounds = array<i64: 2, 8, 256>}, {pipeline_mode = #tpu.pipeline_mode<synchronous>, transform_indices = @transform_1, window_bounds = array<i64: 8, 2>}, {pipeline_mode = #tpu.pipeline_mode<synchronous>, transform_indices = @transform_2, window_bounds = array<i64: 1, 2>}, {pipeline_mode = #tpu.pipeline_mode<synchronous>, transform_indices = @transform_3, window_bounds = array<i64: 2, 8>}, {pipeline_mode = #tpu.pipeline_mode<synchronous>, transform_indices = @transform_4, window_bounds = array<i64: 1, 8>}, {transform_indices = @transform_5, window_bounds = array<i64: 2, 8, 256>}]} {
    %c0 = arith.constant 0 : index
    %c0_0 = arith.constant 0 : index
    %c0_1 = arith.constant 0 : index
    %0 = vector.load %arg1[%c0, %c0_0, %c0_1] : memref<2x8x256xf32, #tpu.memory_space<vmem>>, vector<2x8x256xf32>
    %cst = arith.constant dense<0.000000e+00> : vector<2x8xf32>
    %1 = vector.multi_reduction <add>, %0, %cst [2] : vector<2x8x256xf32> to vector<2x8xf32>
    %cst_2 = arith.constant 3.906250e-03 : f32
    %2 = vector.broadcast %cst_2 : f32 to vector<2x8xf32>
    %3 = arith.mulf %1, %2 : vector<2x8xf32>
    %c0_3 = arith.constant 0 : index
    %c0_4 = arith.constant 0 : index
    %4 = vector.load %arg2[%c0_3, %c0_4] : memref<8x2xf32, #tpu.memory_space<vmem>>, vector<8x2xf32>
    %cst_5 = arith.constant dense<0.000000e+00> : vector<2x2xf32>
    %5 = tpu.matmul %3, %4, %cst_5 {dimension_numbers = #tpu.dot_dimension_numbers<[1], [0], [0], [1], [0, 0, 1, 1], [], []>} : vector<2x8xf32>, vector<8x2xf32>, vector<2x2xf32> -> vector<2x2xf32>
    %c0_6 = arith.constant 0 : index
    %c0_7 = arith.constant 0 : index
    %6 = vector.load %arg3[%c0_6, %c0_7] : memref<1x2xf32, #tpu.memory_space<vmem>>, vector<1x2xf32>
    %7 = vector.broadcast %6 : vector<1x2xf32> to vector<2x2xf32>
    %8 = arith.addf %5, %7 : vector<2x2xf32>
    %cst_8 = arith.constant 0.000000e+00 : f32
    %9 = vector.broadcast %cst_8 : f32 to vector<2x2xf32>
    %10 = arith.maximumf %8, %9 : vector<2x2xf32>
    %c0_9 = arith.constant 0 : index
    %c0_10 = arith.constant 0 : index
    %11 = vector.load %arg4[%c0_9, %c0_10] : memref<2x8xf32, #tpu.memory_space<vmem>>, vector<2x8xf32>
    %cst_11 = arith.constant dense<0.000000e+00> : vector<2x8xf32>
    %12 = tpu.matmul %10, %11, %cst_11 {dimension_numbers = #tpu.dot_dimension_numbers<[1], [0], [0], [1], [0, 0, 1, 1], [], []>} : vector<2x2xf32>, vector<2x8xf32>, vector<2x8xf32> -> vector<2x8xf32>
    %c0_12 = arith.constant 0 : index
    %c0_13 = arith.constant 0 : index
    %13 = vector.load %arg5[%c0_12, %c0_13] : memref<1x8xf32, #tpu.memory_space<vmem>>, vector<1x8xf32>
    %14 = vector.broadcast %13 : vector<1x8xf32> to vector<2x8xf32>
    %15 = arith.addf %12, %14 : vector<2x8xf32>
    %16 = arith.negf %15 : vector<2x8xf32>
    %17 = math.exp %16 : vector<2x8xf32>
    %cst_14 = arith.constant 1.000000e+00 : f32
    %18 = vector.broadcast %cst_14 : f32 to vector<2x8xf32>
    %19 = arith.addf %18, %17 : vector<2x8xf32>
    %20 = arith.divf %18, %19 : vector<2x8xf32>
    %21 = vector.shape_cast %20 : vector<2x8xf32> to vector<2x8x1xf32>
    %22 = vector.broadcast %21 : vector<2x8x1xf32> to vector<2x8x256xf32>
    %23 = arith.mulf %0, %22 : vector<2x8x256xf32>
    %c0_15 = arith.constant 0 : index
    %c0_16 = arith.constant 0 : index
    %c0_17 = arith.constant 0 : index
    %24 = vector.load %arg6[%c0_15, %c0_16, %c0_17] : memref<2x8x256xf32, #tpu.memory_space<vmem>>, vector<2x8x256xf32>
    tpu.vector_store %arg6[%c0_15, %c0_16, %c0_17], %23 {strides = array<i32>} : memref<2x8x256xf32, #tpu.memory_space<vmem>>, vector<2x8x256xf32>,
    return
  }
  func.func @transform_0(%arg0: i32) -> (i32, i32, i32) {
    %c0_i32 = arith.constant 0 : i32
    %c0_i32_0 = arith.constant 0 : i32
    %c0_i32_1 = arith.constant 0 : i32
    return %arg0, %c0_i32, %c0_i32_0 : i32, i32, i32
  }
  func.func @transform_1(%arg0: i32) -> (i32, i32) {
    %c0_i32 = arith.constant 0 : i32
    %c0_i32_0 = arith.constant 0 : i32
    %c0_i32_1 = arith.constant 0 : i32
    return %c0_i32, %c0_i32_0 : i32, i32
  }
  func.func @transform_2(%arg0: i32) -> (i32, i32) {
    %c0_i32 = arith.constant 0 : i32
    %c0_i32_0 = arith.constant 0 : i32
    %c0_i32_1 = arith.constant 0 : i32
    return %c0_i32, %c0_i32_0 : i32, i32
  }
  func.func @transform_3(%arg0: i32) -> (i32, i32) {
    %c0_i32 = arith.constant 0 : i32
    %c0_i32_0 = arith.constant 0 : i32
    %c0_i32_1 = arith.constant 0 : i32
    return %c0_i32, %c0_i32_0 : i32, i32
  }
  func.func @transform_4(%arg0: i32) -> (i32, i32) {
    %c0_i32 = arith.constant 0 : i32
    %c0_i32_0 = arith.constant 0 : i32
    %c0_i32_1 = arith.constant 0 : i32
    return %c0_i32, %c0_i32_0 : i32, i32
  }
  func.func @transform_5(%arg0: i32) -> (i32, i32, i32) {
    %c0_i32 = arith.constant 0 : i32
    %c0_i32_0 = arith.constant 0 : i32
    %c0_i32_1 = arith.constant 0 : i32
    return %arg0, %c0_i32, %c0_i32_0 : i32, i32, i32
  }
}

</mosaic_0001>

<bundles_post_ra>
// kernel: squeeze_excite.1
= control target key start
LH: loop header
LB: loop body
LE: loop exit
PB: predicated region body
PF: predicated region fallthrough
CT: control target
= control target key end

     0   :  { %v39_v8 = vlaneseq  ;;  %vm43_vm0 = vcmask 1041409   ;;  %vm45_vm1 = vcmask 64512   ;;  %vm78_vm2 = vcmask 1041408   ;;  %s241_s0 = inlined_call_operand.vmem [shape: f32[2,8,256], index: 0, kind: input, shape index: {}]   ;;  %s242_s2 = inlined_call_operand.vmem [shape: f32[1,2], index: 2, kind: input, shape index: {}]   ;;  %s243_s1 = inlined_call_operand.vmem [shape: f32[8,2], index: 1, kind: input, shape index: {}]   ;;  %s244_s4 = inlined_call_operand.vmem [shape: f32[1,8], index: 4, kind: input, shape index: {}]   ;;  %s245_s3 = inlined_call_operand.vmem [shape: f32[2,8], index: 3, kind: input, shape index: {}]   ;;  %s246_s5 = inlined_call_operand.vmem [shape: f32[2,8,256], index: 5, kind: output, shape index: {}]  }
   0x1   :  { %v192_v0 = vld [vmem:[%s241_s0] sm:$0xff]  ;;  %v197_v1 = vld [vmem:[%s241_s0 + $0x8] sm:$0xff]  ;;  %v204_v3 = vld [vmem:[%s241_s0 + $0x10] sm:$0xff]  ;;  %vm74_vm3 = vcmask 15360  }
   0x2   :  { %v24_v2 = vadd.f32 %v197_v1, %v192_v0  ;;  %v209_v4 = vld [vmem:[%s241_s0 + $0x18] sm:$0xff]  ;;  %v32_v6 = vld [vmem:[%s243_s1] sm:$0xff]  ;;  %v40_v9 = vand.u32 127, %v39_v8  ;;  %v123_v21 = vshrl.u32 %v39_v8, 7 }
   0x3   :  { %v27_v5 = vadd.f32 %v209_v4, %v204_v3  ;;  %63 = vmatpush.msra.mxu0 %v32_v6  ;;  %v69_v16 = vld [vmem:[%s245_s3] sm:$0x3] }
   0x4   :  { %25 = vadd.xlane.f32.xlu0 %v24_v2  ;;  %148 = vmatpush.msk.msra.mxu1 %vm78_vm2, %v69_v16  ;;  %v153_v17 = vld [vmem:[%s242_s2] ss:$0 sm:$0xff] }
   0x5   :  { %151 = vset.pattern.permute.xlu1 %v123_v21  ;;  %152 = vset.pattern.permute.xlu0 %v123_v21  ;;  %v154_v22 = vld [vmem:[%s244_s4] ss:$0 sm:$0xff] }
   0xc   :  { %28 = vadd.xlane.f32.xlu0 %v27_v5 }
  0x77   :  { %v26_v7 = vpop.xlane.xlu0 %25 }
  0x78   :  { %v30_v10 = vmul.f32 0.00390625, %v26_v7 }
  0x7a   :  { %v41_v13 = vperm.slane %v30_v10, %v40_v9 }
  0x7f   :  { %v29_v11 = vpop.xlane.xlu0 %28 }
  0x80   :  { %v31_v12 = vmul.f32 0.00390625, %v29_v11 }
  0x82   :  { %v42_v14 = vperm.slane %v31_v12, %v40_v9 }
  0x84   :  { %v44_v15 = vsel %vm43_vm0, %v42_v14, %v41_v13 }
  0x85   :  { %147 = vmatmul.msk.f32.vlgmr.msra.gmra.mxu0 %vm45_vm1, %v44_v15 }
 0x102   :  { %v65_v18 = vpop.f32.mrf.mxu0 }
 0x103   :  { %v66_v19 = vadd.f32 %v153_v17, %v65_v18 }
 0x105   :  { %v68_v20 = vmax.f32 %v66_v19, 0.0 }
 0x107   :  { %149 = vmatmul.msk.f32.vlgmr.msra.gmra.mxu1 %vm74_vm3, %v68_v20 }
 0x184   :  { %v99_v23 = vpop.f32.mrf.mxu1 }
 0x185   :  { %v100_v24 = vadd.f32 %v154_v22, %v99_v23 }
 0x187   :  { %v150_v25 = vmul.f32 -1.442695, %v100_v24 }
 0x189   :  { %155 = vpow2.f32 %v150_v25 }
 0x18f   :  { %v156_v26 = vpop.eup %155 }
 0x190   :  { %v105_v27 = vadd.f32 1.0, %v156_v26 }
 0x192   :  { %157 = vrcp.f32 %v105_v27  ;;  %v117_v31 = vand.u32 2147483648, %v105_v27  ;;  %v115_v33 = vand.u32 2147483647, %v105_v27  ;;  %vm111_vm5 = vweird.f32 %v105_v27 }
 0x194   :  { %v118_v35 = vor.u32 1.1754944e-38, %v117_v31  ;;  %vm116_vm7 = vcmp.eq.f32.partialorder %v115_v33, 8.507059e+37 }
 0x198   :  { %v158_v28 = vpop.eup %157 }
 0x199   :  { %v107_v29 = vmul.f32 %v158_v28, %v105_v27  ;;  %vm112_vm4 = vweird.f32 %v158_v28 }
 0x19a   :  { %vm113_vm6 = vmor %vm111_vm5, %vm112_vm4 }
 0x19b   :  { %v108_v30 = vsub.f32 1.0, %v107_v29 }
 0x19d   :  { %v109_v32 = vmul.f32 %v158_v28, %v108_v30 }
 0x19f   :  { %v110_v34 = vadd.f32 %v158_v28, %v109_v32 }
 0x1a1   :  { %v114_v36 = vsel %vm113_vm6, %v158_v28, %v110_v34 }
 0x1a2   :  { %v119_v37 = vsel %vm116_vm7, %v118_v35, %v114_v36 }
 0x1a3   :  { %v121_v38 = vperm.slane %v119_v37, 0  ;;  %v128_v39 = vperm.slane %v119_v37, 1 }
 0x1a5   :  { %126 = vperm.xlu1 %151, %v121_v38  }
 0x1ad   :  { %133 = vperm.xlu1 %151, %v128_v39  }
 0x217   :  { %v127_v40 = vpop.permute.xlu1 %126 }
 0x218   :  { %v135_v41 = vmul.f32 %v127_v40, %v192_v0  ;;  %v136_v42 = vmul.f32 %v127_v40, %v197_v1 }
 0x21a   :  { %139 = vst [vmem:[%s246_s5] sm:$0xff] %v135_v41 }
 0x21b   :  { %140 = vst [vmem:[%s246_s5 + $0x8] sm:$0xff] %v136_v42 }
 0x21f   :  { %v134_v43 = vpop.permute.xlu1 %133 }
 0x220   :  { %v137_v44 = vmul.f32 %v134_v43, %v204_v3  ;;  %v138_v45 = vmul.f32 %v134_v43, %v209_v4 }
 0x222   :  { %141 = vst [vmem:[%s246_s5 + $0x10] sm:$0xff] %v137_v44 }
 0x223   :  { %142 = vst [vmem:[%s246_s5 + $0x18] sm:$0xff] %v138_v45 }

</bundles_post_ra>
